<compile_context>
chip_gen: v7x
topology: tpu7x:2x2x1
jax: 0.10.0
libtpu: 0.0.40
codegen_flags: <defaults>
</compile_context>

<pallas_src>
import jax
import jax.numpy as jnp
from jax.experimental import pallas as pl
from jax.experimental.pallas import tpu as pltpu

LANE = 128      # lane width: pad the output feature dim to a multiple of this
TILE_M = 256    # batch tile (multiple of 128; tiny VMEM footprint on all gens)


def mlp_kernel(x_ref,
               w1_ref, b1_ref,
               w2_ref, b2_ref,
               w3_ref, b3_ref,
               w4_ref, b4_ref,
               o_ref):
    # x: bf16 (TILE_M, in); w: bf16 (in, out); b: f32 (1, out); o: f32.
    h = jnp.dot(x_ref[...], w1_ref[...], preferred_element_type=jnp.float32)
    h = jnp.maximum(h + b1_ref[...], 0.0).astype(jnp.bfloat16)

    h = jnp.dot(h, w2_ref[...], preferred_element_type=jnp.float32)
    h = jnp.maximum(h + b2_ref[...], 0.0).astype(jnp.bfloat16)

    h = jnp.dot(h, w3_ref[...], preferred_element_type=jnp.float32)
    h = jnp.maximum(h + b3_ref[...], 0.0).astype(jnp.bfloat16)

    out = jnp.dot(h, w4_ref[...], preferred_element_type=jnp.float32) + b4_ref[...]
    o_ref[...] = out.astype(o_ref.dtype)


def prepare_kernel_params(params):
    """Cast weights to bf16 and zero-pad layer 4's output dim to a lane multiple."""
    kp = {}
    for i in range(1, 5):
        w = params[f"w{i}"]
        b = params[f"b{i}"]
        if i == 4:
            out = w.shape[1]
            out_pad = pl.cdiv(out, LANE) * LANE
            w = jnp.pad(w, ((0, 0), (0, out_pad - out)))
            b = jnp.pad(b, ((0, 0), (0, out_pad - out)))
        kp[f"w{i}"] = w.astype(jnp.bfloat16)
        kp[f"b{i}"] = b.astype(jnp.float32)
    return kp


def simple_ann_forward(x, kparams, out_size, *, tile_m=TILE_M):
    batch, in_size = x.shape
    out_pad = kparams["w4"].shape[1]

    # Pad batch up to a multiple of the tile; extra rows are sliced off below.
    b_pad = pl.cdiv(batch, tile_m) * tile_m
    x_bf16 = x.astype(jnp.bfloat16)
    if b_pad != batch:
        x_bf16 = jnp.pad(x_bf16, ((0, b_pad - batch), (0, 0)))

    grid = (b_pad // tile_m,)

    def resident(shape):
        # Same full block every grid step -> weights/biases stay in VMEM.
        return pl.BlockSpec(shape, lambda i: (0, 0))

    in_specs = [
        pl.BlockSpec((tile_m, in_size), lambda i: (i, 0)),   # x: tiled over batch
        resident(kparams["w1"].shape), resident(kparams["b1"].shape),
        resident(kparams["w2"].shape), resident(kparams["b2"].shape),
        resident(kparams["w3"].shape), resident(kparams["b3"].shape),
        resident(kparams["w4"].shape), resident(kparams["b4"].shape),
    ]
    out_specs = pl.BlockSpec((tile_m, out_pad), lambda i: (i, 0))

    out = pl.pallas_call(
        mlp_kernel,
        out_shape=jax.ShapeDtypeStruct((b_pad, out_pad), jnp.float32),
        grid=grid,
        in_specs=in_specs,
        out_specs=out_specs,
        compiler_params=pltpu.CompilerParams(
            dimension_semantics=("parallel",)),   # v7x: shard batch across 2 TCs
    )(x_bf16,
      kparams["w1"], kparams["b1"],
      kparams["w2"], kparams["b2"],
      kparams["w3"], kparams["b3"],
      kparams["w4"], kparams["b4"])

    return out[:batch, :out_size]


def init_params(key, input_size, hidden_sizes, output_size):
    """Deterministic init mimicking nn.Linear's U(-1/sqrt(fan_in), 1/sqrt(fan_in))."""
    dims = [input_size] + list(hidden_sizes) + [output_size]
    params = {}
    for i in range(4):
        fan_in, fan_out = dims[i], dims[i + 1]
        key, kw, kb = jax.random.split(key, 3)
        bound = 1.0 / (fan_in ** 0.5)
        # Stored (in, out): kernel computes x @ W, equivalent to PyTorch x @ W.T.
        params[f"w{i+1}"] = jax.random.uniform(
            kw, (fan_in, fan_out), jnp.float32, minval=-bound, maxval=bound)
        params[f"b{i+1}"] = jax.random.uniform(
            kb, (1, fan_out), jnp.float32, minval=-bound, maxval=bound)
    return params


def reference_forward_bf16(x, params):
    """Pure-JAX reference with the kernel's numerics (bf16 inputs, f32 accum)."""
    h = x.astype(jnp.bfloat16)
    for i in range(1, 4):
        h = jnp.dot(h, params[f"w{i}"].astype(jnp.bfloat16),
                    preferred_element_type=jnp.float32) + params[f"b{i}"]
        h = jnp.maximum(h, 0.0).astype(jnp.bfloat16)
    return jnp.dot(h, params["w4"].astype(jnp.bfloat16),
                   preferred_element_type=jnp.float32) + params["b4"]


def reference_forward_f32(x, params):
    h = jnp.maximum(x @ params["w1"] + params["b1"], 0.0)
    h = jnp.maximum(h @ params["w2"] + params["b2"], 0.0)
    h = jnp.maximum(h @ params["w3"] + params["b3"], 0.0)
    return h @ params["w4"] + params["b4"]


if __name__ == "__main__":
    input_size = 32
    hidden_sizes = [64, 64, 32]
    output_size = 16

    key = jax.random.PRNGKey(0)
    key, kx_small, kx_big = jax.random.split(key, 3)
    params = init_params(key, input_size, hidden_sizes, output_size)
    kparams = prepare_kernel_params(params)

    # Small batch: pads up to one 256-row tile, grid=(1,).
    x_small = jax.random.normal(kx_small, (8, input_size), dtype=jnp.float32)
    out_small = jax.block_until_ready(
        simple_ann_forward(x_small, kparams, output_size))
    assert out_small.shape == (8, output_size)

    # Larger batch exercising multiple grid steps: 1000 -> 1024 padded, grid=(4,).
    x_big = jax.random.normal(kx_big, (1000, input_size), dtype=jnp.float32)
    out_big = jax.block_until_ready(
        simple_ann_forward(x_big, kparams, output_size))
    assert out_big.shape == (1000, output_size)

    for x, out in ((x_small, out_small), (x_big, out_big)):
        ref_bf16 = reference_forward_bf16(x, params)
        assert jnp.allclose(out, ref_bf16, atol=1e-3, rtol=1e-3), \
            "mismatch vs bf16-numerics reference"
        ref_f32 = reference_forward_f32(x, params)
        assert jnp.allclose(out, ref_f32, atol=5e-2, rtol=5e-2), \
            "mismatch vs f32 reference"

    print("KERNEL_OK")
</pallas_src>

<mosaic_0001>
module attributes {stable_mosaic.version = 11 : i64} {
  func.func @mlp_kernel(%arg0: i32, %arg1: memref<256x32xbf16, #tpu.memory_space<vmem>>, %arg2: memref<32x64xbf16, #tpu.memory_space<vmem>>, %arg3: memref<1x64xf32, #tpu.memory_space<vmem>>, %arg4: memref<64x64xbf16, #tpu.memory_space<vmem>>, %arg5: memref<1x64xf32, #tpu.memory_space<vmem>>, %arg6: memref<64x32xbf16, #tpu.memory_space<vmem>>, %arg7: memref<1x32xf32, #tpu.memory_space<vmem>>, %arg8: memref<32x128xbf16, #tpu.memory_space<vmem>>, %arg9: memref<1x128xf32, #tpu.memory_space<vmem>>, %arg10: memref<256x128xf32, #tpu.memory_space<vmem>>) attributes {dimension_semantics = [#tpu.dimension_semantics<parallel>], iteration_bounds = array<i64: 1>, scalar_prefetch = 0 : i64, scratch_operands = 0 : i64, tpu.core_type = #tpu.core_type<tc>, window_params = [{transform_indices = @transform_0, window_bounds = array<i64: 256, 32>}, {pipeline_mode = #tpu.pipeline_mode<synchronous>, transform_indices = @transform_1, window_bounds = array<i64: 32, 64>}, {pipeline_mode = #tpu.pipeline_mode<synchronous>, transform_indices = @transform_2, window_bounds = array<i64: 1, 64>}, {pipeline_mode = #tpu.pipeline_mode<synchronous>, transform_indices = @transform_3, window_bounds = array<i64: 64, 64>}, {pipeline_mode = #tpu.pipeline_mode<synchronous>, transform_indices = @transform_4, window_bounds = array<i64: 1, 64>}, {pipeline_mode = #tpu.pipeline_mode<synchronous>, transform_indices = @transform_5, window_bounds = array<i64: 64, 32>}, {pipeline_mode = #tpu.pipeline_mode<synchronous>, transform_indices = @transform_6, window_bounds = array<i64: 1, 32>}, {pipeline_mode = #tpu.pipeline_mode<synchronous>, transform_indices = @transform_7, window_bounds = array<i64: 32, 128>}, {pipeline_mode = #tpu.pipeline_mode<synchronous>, transform_indices = @transform_8, window_bounds = array<i64: 1, 128>}, {transform_indices = @transform_9, window_bounds = array<i64: 256, 128>}]} {
    %c0 = arith.constant 0 : index
    %c0_0 = arith.constant 0 : index
    %0 = vector.load %arg1[%c0, %c0_0] : memref<256x32xbf16, #tpu.memory_space<vmem>>, vector<256x32xbf16>
    %c0_1 = arith.constant 0 : index
    %c0_2 = arith.constant 0 : index
    %1 = vector.load %arg2[%c0_1, %c0_2] : memref<32x64xbf16, #tpu.memory_space<vmem>>, vector<32x64xbf16>
    %cst = arith.constant dense<0.000000e+00> : vector<256x64xf32>
    %2 = tpu.matmul %0, %1, %cst {dimension_numbers = #tpu.dot_dimension_numbers<[1], [0], [0], [1], [0, 0, 1, 1], [], []>} : vector<256x32xbf16>, vector<32x64xbf16>, vector<256x64xf32> -> vector<256x64xf32>
    %c0_3 = arith.constant 0 : index
    %c0_4 = arith.constant 0 : index
    %3 = vector.load %arg3[%c0_3, %c0_4] : memref<1x64xf32, #tpu.memory_space<vmem>>, vector<1x64xf32>
    %4 = vector.broadcast %3 : vector<1x64xf32> to vector<256x64xf32>
    %5 = arith.addf %2, %4 : vector<256x64xf32>
    %cst_5 = arith.constant 0.000000e+00 : f32
    %6 = vector.broadcast %cst_5 : f32 to vector<256x64xf32>
    %7 = arith.maximumf %5, %6 : vector<256x64xf32>
    %8 = arith.truncf %7 : vector<256x64xf32> to vector<256x64xbf16>
    %c0_6 = arith.constant 0 : index
    %c0_7 = arith.constant 0 : index
    %9 = vector.load %arg4[%c0_6, %c0_7] : memref<64x64xbf16, #tpu.memory_space<vmem>>, vector<64x64xbf16>
    %cst_8 = arith.constant dense<0.000000e+00> : vector<256x64xf32>
    %10 = tpu.matmul %8, %9, %cst_8 {dimension_numbers = #tpu.dot_dimension_numbers<[1], [0], [0], [1], [0, 0, 1, 1], [], []>} : vector<256x64xbf16>, vector<64x64xbf16>, vector<256x64xf32> -> vector<256x64xf32>
    %c0_9 = arith.constant 0 : index
    %c0_10 = arith.constant 0 : index
    %11 = vector.load %arg5[%c0_9, %c0_10] : memref<1x64xf32, #tpu.memory_space<vmem>>, vector<1x64xf32>
    %12 = vector.broadcast %11 : vector<1x64xf32> to vector<256x64xf32>
    %13 = arith.addf %10, %12 : vector<256x64xf32>
    %cst_11 = arith.constant 0.000000e+00 : f32
    %14 = vector.broadcast %cst_11 : f32 to vector<256x64xf32>
    %15 = arith.maximumf %13, %14 : vector<256x64xf32>
    %16 = arith.truncf %15 : vector<256x64xf32> to vector<256x64xbf16>
    %c0_12 = arith.constant 0 : index
    %c0_13 = arith.constant 0 : index
    %17 = vector.load %arg6[%c0_12, %c0_13] : memref<64x32xbf16, #tpu.memory_space<vmem>>, vector<64x32xbf16>
    %cst_14 = arith.constant dense<0.000000e+00> : vector<256x32xf32>
    %18 = tpu.matmul %16, %17, %cst_14 {dimension_numbers = #tpu.dot_dimension_numbers<[1], [0], [0], [1], [0, 0, 1, 1], [], []>} : vector<256x64xbf16>, vector<64x32xbf16>, vector<256x32xf32> -> vector<256x32xf32>
    %c0_15 = arith.constant 0 : index
    %c0_16 = arith.constant 0 : index
    %19 = vector.load %arg7[%c0_15, %c0_16] : memref<1x32xf32, #tpu.memory_space<vmem>>, vector<1x32xf32>
    %20 = vector.broadcast %19 : vector<1x32xf32> to vector<256x32xf32>
    %21 = arith.addf %18, %20 : vector<256x32xf32>
    %cst_17 = arith.constant 0.000000e+00 : f32
    %22 = vector.broadcast %cst_17 : f32 to vector<256x32xf32>
    %23 = arith.maximumf %21, %22 : vector<256x32xf32>
    %24 = arith.truncf %23 : vector<256x32xf32> to vector<256x32xbf16>
    %c0_18 = arith.constant 0 : index
    %c0_19 = arith.constant 0 : index
    %25 = vector.load %arg8[%c0_18, %c0_19] : memref<32x128xbf16, #tpu.memory_space<vmem>>, vector<32x128xbf16>
    %cst_20 = arith.constant dense<0.000000e+00> : vector<256x128xf32>
    %26 = tpu.matmul %24, %25, %cst_20 {dimension_numbers = #tpu.dot_dimension_numbers<[1], [0], [0], [1], [0, 0, 1, 1], [], []>} : vector<256x32xbf16>, vector<32x128xbf16>, vector<256x128xf32> -> vector<256x128xf32>
    %c0_21 = arith.constant 0 : index
    %c0_22 = arith.constant 0 : index
    %27 = vector.load %arg9[%c0_21, %c0_22] : memref<1x128xf32, #tpu.memory_space<vmem>>, vector<1x128xf32>
    %28 = vector.broadcast %27 : vector<1x128xf32> to vector<256x128xf32>
    %29 = arith.addf %26, %28 : vector<256x128xf32>
    %c0_23 = arith.constant 0 : index
    %c0_24 = arith.constant 0 : index
    %30 = vector.load %arg10[%c0_23, %c0_24] : memref<256x128xf32, #tpu.memory_space<vmem>>, vector<256x128xf32>
    tpu.vector_store %arg10[%c0_23, %c0_24], %29 {strides = array<i32>} : memref<256x128xf32, #tpu.memory_space<vmem>>, vector<256x128xf32>,
    return
  }
  func.func @transform_0(%arg0: i32) -> (i32, i32) {
    %c0_i32 = arith.constant 0 : i32
    %c0_i32_0 = arith.constant 0 : i32
    return %arg0, %c0_i32 : i32, i32
  }
  func.func @transform_1(%arg0: i32) -> (i32, i32) {
    %c0_i32 = arith.constant 0 : i32
    %c0_i32_0 = arith.constant 0 : i32
    %c0_i32_1 = arith.constant 0 : i32
    return %c0_i32, %c0_i32_0 : i32, i32
  }
  func.func @transform_2(%arg0: i32) -> (i32, i32) {
    %c0_i32 = arith.constant 0 : i32
    %c0_i32_0 = arith.constant 0 : i32
    %c0_i32_1 = arith.constant 0 : i32
    return %c0_i32, %c0_i32_0 : i32, i32
  }
  func.func @transform_3(%arg0: i32) -> (i32, i32) {
    %c0_i32 = arith.constant 0 : i32
    %c0_i32_0 = arith.constant 0 : i32
    %c0_i32_1 = arith.constant 0 : i32
    return %c0_i32, %c0_i32_0 : i32, i32
  }
  func.func @transform_4(%arg0: i32) -> (i32, i32) {
    %c0_i32 = arith.constant 0 : i32
    %c0_i32_0 = arith.constant 0 : i32
    %c0_i32_1 = arith.constant 0 : i32
    return %c0_i32, %c0_i32_0 : i32, i32
  }
  func.func @transform_5(%arg0: i32) -> (i32, i32) {
    %c0_i32 = arith.constant 0 : i32
    %c0_i32_0 = arith.constant 0 : i32
    %c0_i32_1 = arith.constant 0 : i32
    return %c0_i32, %c0_i32_0 : i32, i32
  }
  func.func @transform_6(%arg0: i32) -> (i32, i32) {
    %c0_i32 = arith.constant 0 : i32
    %c0_i32_0 = arith.constant 0 : i32
    %c0_i32_1 = arith.constant 0 : i32
    return %c0_i32, %c0_i32_0 : i32, i32
  }
  func.func @transform_7(%arg0: i32) -> (i32, i32) {
    %c0_i32 = arith.constant 0 : i32
    %c0_i32_0 = arith.constant 0 : i32
    %c0_i32_1 = arith.constant 0 : i32
    return %c0_i32, %c0_i32_0 : i32, i32
  }
  func.func @transform_8(%arg0: i32) -> (i32, i32) {
    %c0_i32 = arith.constant 0 : i32
    %c0_i32_0 = arith.constant 0 : i32
    %c0_i32_1 = arith.constant 0 : i32
    return %c0_i32, %c0_i32_0 : i32, i32
  }
  func.func @transform_9(%arg0: i32) -> (i32, i32) {
    %c0_i32 = arith.constant 0 : i32
    %c0_i32_0 = arith.constant 0 : i32
    return %arg0, %c0_i32 : i32, i32
  }
}

</mosaic_0001>

<bundles_post_ra>
// kernel: tpu_custom_call.1
= control target key start
LH: loop header
LB: loop body
LE: loop exit
PB: predicated region body
PF: predicated region fallthrough
CT: control target
= control target key end

     0   :  { %vm169_vm0 = vcmask 261120   ;;  %s2040_s0 = inlined_call_operand.vmem [shape: bf16[256,32], index: 0, kind: input, shape index: {}]   ;;  %s2041_s1 = inlined_call_operand.vmem [shape: bf16[32,64], index: 1, kind: input, shape index: {}]   ;;  %s2042_s2 = inlined_call_operand.vmem [shape: f32[1,64], index: 2, kind: input, shape index: {}]   ;;  %s2043_s3 = inlined_call_operand.vmem [shape: bf16[64,64], index: 3, kind: input, shape index: {}]   ;;  %s2044_s4 = inlined_call_operand.vmem [shape: f32[1,64], index: 4, kind: input, shape index: {}]   ;;  %s2045_s5 = inlined_call_operand.vmem [shape: bf16[64,32], index: 5, kind: input, shape index: {}]   ;;  %s2046_s6 = inlined_call_operand.vmem [shape: f32[1,32], index: 6, kind: input, shape index: {}]   ;;  %s2047_s7 = inlined_call_operand.vmem [shape: bf16[32,128], index: 7, kind: input, shape index: {}]   ;;  %s2048_s8 = inlined_call_operand.vmem [shape: f32[1,128], index: 8, kind: input, shape index: {}]   ;;  %s2049_s9 = inlined_call_operand.hbm [shape: f32[256,128], index: 9, kind: output, shape index: {}]  }
   0x1   :  { %v1627_v0 = vld [vmem:[%s2041_s1] sm:$0xff]   ;;  %v1628_v1 = vld [vmem:[%s2041_s1 + $0x8] sm:$0xff]   ;;  %v1631_v4 = vld [vmem:[%s2040_s0 + $0x10] sm:$0xff]  }
   0x2   :  { %1472 = vmatprep.subr.bf16.mxu0 %v1627_v0  ;;  %v1629_v2 = vld [vmem:[%s2040_s0] sm:$0xff]   ;;  %v1630_v3 = vld [vmem:[%s2040_s0 + $0x8] sm:$0xff]   ;;  %v1632_v5 = vld [vmem:[%s2040_s0 + $0x18] sm:$0xff]  }
   0x3   :  { %1473 = vmatpush3.bf16.msra.mxu0 %v1627_v0  ;;  %1476 = vmatprep.mubr.msk.bf16.mxu0 %vm169_vm0, %v1629_v2  ;;  %v1633_v6 = vld [vmem:[%s2040_s0 + $0x20] sm:$0xff]   ;;  %v1646_v8 = vld [vmem:[%s2043_s3 + $0x8] sm:$0xff]   ;;  %v1635_v10 = vld [vmem:[%s2040_s0 + $0x30] sm:$0xff]  }
   0x4   :  { %1474 = vmatprep.subr.bf16.mxu0 %v1628_v1  ;;  %v1645_v7 = vld [vmem:[%s2043_s3] sm:$0xff]   ;;  %v1634_v9 = vld [vmem:[%s2040_s0 + $0x28] sm:$0xff]  }
   0x5   :  { %1508 = vmatprep.subr.bf16.mxu1 %v1645_v7 }
   0x6   :  { %1509 = vmatpush3.bf16.msra.mxu1 %v1645_v7 }
   0x7   :  { %1475 = vmatpush3.bf16.msra.mxu0 %v1628_v1  ;;  %1510 = vmatprep.subr.bf16.mxu1 %v1646_v8 }
   0xa   :  { %1477 = vmatmul.mubr.msk.bf16.vlgmr.msra.gmra.mrb[0].mxu0 %vm169_vm0, %v1630_v3  ;;  %1511 = vmatpush3.bf16.msra.mxu1 %v1646_v8 }
   0xb   :  { %1480 = vmatprep.mubr.msk.bf16.mxu0 %vm169_vm0, %v1631_v4 }
  0x12   :  { %1481 = vmatmul.mubr.msk.bf16.gmra.mrb[4].mxu0 %vm169_vm0, %v1632_v5 }
  0x13   :  { %1484 = vmatprep.mubr.msk.bf16.mxu0 %vm169_vm0, %v1633_v6 }
  0x14   :  { %14 = vsyncpa [#allocation3], 0  ;;  %v1636_v11 = vld [vmem:[%s2040_s0 + $0x38] sm:$0xff]   ;;  %v1637_v12 = vld [vmem:[%s2040_s0 + $0x40] sm:$0xff]   ;;  %vm466_vm1 = vcmask 523264  }
  0x15   :  { %v1638_v13 = vld [vmem:[%s2040_s0 + $0x48] sm:$0xff]   ;;  %v1639_v14 = vld [vmem:[%s2040_s0 + $0x50] sm:$0xff]   ;;  %v1640_v15 = vld [vmem:[%s2040_s0 + $0x58] sm:$0xff]  }
  0x16   :  { %v1641_v16 = vld [vmem:[%s2040_s0 + $0x60] sm:$0xff]   ;;  %v1642_v17 = vld [vmem:[%s2040_s0 + $0x68] sm:$0xff]   ;;  %v1643_v18 = vld [vmem:[%s2040_s0 + $0x70] sm:$0xff]  }
  0x17   :  { %v1644_v19 = vld [vmem:[%s2040_s0 + $0x78] sm:$0xff]   ;;  %v1647_v20 = vld [vmem:[%s2043_s3 + $0x10] sm:$0xff]   ;;  %v1649_v22 = vld [vmem:[%s2045_s5] sm:$0xff]  }
  0x18   :  { %1512 = vmatprep.subr.bf16.mxu1 %v1647_v20  ;;  %v1648_v21 = vld [vmem:[%s2043_s3 + $0x18] sm:$0xff]   ;;  %v1650_v23 = vld [vmem:[%s2045_s5 + $0x8] sm:$0xff]   ;;  %1548 = vmatprep.subr.bf16.mxu0 %v1649_v22  ;;  %v1651_v24 = vld [vmem:[%s2045_s5 + $0x10] sm:$0xff]  }
  0x19   :  { %1513 = vmatpush3.bf16.msra.mxu1 %v1647_v20  ;;  %1549 = vmatpush3.bf16.msra.mxu0 %v1649_v22  ;;  %v1652_v25 = vld [vmem:[%s2045_s5 + $0x18] sm:$0xff]   ;;  %v1829_v26 = vld [vmem:[%s2042_s2] ss:$0 sm:$0xff] }
  0x1a   :  { %1485 = vmatmul.mubr.msk.bf16.gmra.mrb[8].mxu0 %vm169_vm0, %v1634_v9  ;;  %1514 = vmatprep.subr.bf16.mxu1 %v1648_v21 }
  0x1b   :  { %1488 = vmatprep.mubr.msk.bf16.mxu0 %vm169_vm0, %v1635_v10  ;;  %1550 = vmatprep.subr.bf16.mxu0 %v1650_v23 }
  0x1d   :  { %1515 = vmatpush3.bf16.msra.mxu1 %v1648_v21  ;;  %1551 = vmatpush3.bf16.msra.mxu0 %v1650_v23 }
  0x1e   :  { %1552 = vmatprep.subr.bf16.mxu0 %v1651_v24 }
  0x21   :  { %1553 = vmatpush3.bf16.msra.mxu0 %v1651_v24 }
  0x22   :  { %1489 = vmatmul.mubr.msk.bf16.gmra.mrb[12].mxu0 %vm169_vm0, %v1636_v11  ;;  %1554 = vmatprep.subr.bf16.mxu0 %v1652_v25 }
  0x23   :  { %1492 = vmatprep.mubr.msk.bf16.mxu0 %vm169_vm0, %v1637_v12 }
  0x25   :  { %1555 = vmatpush3.bf16.msra.mxu0 %v1652_v25 }
  0x2a   :  { %1493 = vmatmul.mubr.msk.bf16.gmra.mrb[16].mxu0 %vm169_vm0, %v1638_v13 }
  0x2b   :  { %1496 = vmatprep.mubr.msk.bf16.mxu0 %vm169_vm0, %v1639_v14 }
  0x32   :  { %1497 = vmatmul.mubr.msk.bf16.gmra.mrb[20].mxu0 %vm169_vm0, %v1640_v15 }
  0x33   :  { %1500 = vmatprep.mubr.msk.bf16.mxu0 %vm169_vm0, %v1641_v16 }
  0x3a   :  { %1501 = vmatmul.mubr.msk.bf16.gmra.mrb[24].mxu0 %vm169_vm0, %v1642_v17 }
  0x3b   :  { %1504 = vmatprep.mubr.msk.bf16.mxu0 %vm169_vm0, %v1643_v18 }
  0x42   :  { %1505 = vmatmul.mubr.msk.bf16.gmra.mrb[28].mxu0 %vm169_vm0, %v1644_v19 }
  0xdd   :  { %v1478_v27 = vpop.f32.mrb[0].mxu0 }
  0xde   :  { %v261_v28 = vadd.f32 %v1478_v27, %v1829_v26  ;;  %v252_v29 = vpop.f32.mrb[1].mxu0 }
  0xdf   :  { %v253_v30 = vadd.f32 %v1829_v26, %v252_v29  ;;  %v1479_v31 = vpop.f32.mrb[2].mxu0 }
  0xe0   :  { %v264_v32 = vadd.f32 %v1479_v31, %v1829_v26  ;;  %v255_v33 = vpop.f32.mrb[3].mxu0  ;;  %v381_v35 = vmax.f32 %v261_v28, 0.0 }
  0xe1   :  { %v256_v34 = vadd.f32 %v1829_v26, %v255_v33  ;;  %v379_v37 = vmax.f32 %v253_v30, 0.0 }
  0xe2   :  { %v382_v36 = vmax.f32 %v264_v32, 0.0 }
  0xe3   :  { %v380_v38 = vmax.f32 %v256_v34, 0.0 }
  0xe4   :  { %v412_v39 = vpack.c.bf16 %v382_v36, %v381_v35 }
  0xe5   :  { %v1482_v40 = vpop.f32.mrb[4].mxu0  ;;  %v411_v41 = vpack.c.bf16 %v380_v38, %v379_v37 }
  0xe6   :  { %v277_v42 = vadd.f32 %v1482_v40, %v1829_v26  ;;  %v268_v43 = vpop.f32.mrb[5].mxu0 }
  0xe7   :  { %v269_v44 = vadd.f32 %v1829_v26, %v268_v43  ;;  %v1483_v45 = vpop.f32.mrb[6].mxu0  ;;  %1516 = vmatprep.mubr.msk.bf16.mxu1 %vm466_vm1, %v411_v41 }
  0xe8   :  { %v280_v46 = vadd.f32 %v1483_v45, %v1829_v26  ;;  %v271_v47 = vpop.f32.mrb[7].mxu0  ;;  %1517 = vmatmul.mubr.msk.bf16.vlgmr.msra.gmra.mrb[0].mxu1 %vm466_vm1, %v412_v39  ;;  %v385_v49 = vmax.f32 %v277_v42, 0.0 }
  0xe9   :  { %v272_v48 = vadd.f32 %v1829_v26, %v271_v47  ;;  %v383_v51 = vmax.f32 %v269_v44, 0.0 }
  0xea   :  { %v386_v50 = vmax.f32 %v280_v46, 0.0 }
  0xeb   :  { %v384_v52 = vmax.f32 %v272_v48, 0.0 }
  0xec   :  { %v414_v53 = vpack.c.bf16 %v386_v50, %v385_v49 }
  0xed   :  { %v413_v54 = vpack.c.bf16 %v384_v52, %v383_v51  ;;  %v1486_v55 = vpop.f32.mrb[8].mxu0 }
  0xee   :  { %v293_v56 = vadd.f32 %v1486_v55, %v1829_v26  ;;  %v284_v57 = vpop.f32.mrb[9].mxu0 }
  0xef   :  { %v285_v58 = vadd.f32 %v1829_v26, %v284_v57  ;;  %v1487_v59 = vpop.f32.mrb[10].mxu0  ;;  %1520 = vmatprep.mubr.msk.bf16.mxu1 %vm466_vm1, %v413_v54 }
  0xf0   :  { %v296_v60 = vadd.f32 %v1487_v59, %v1829_v26  ;;  %v287_v61 = vpop.f32.mrb[11].mxu0  ;;  %1521 = vmatmul.mubr.msk.bf16.gmra.mrb[4].mxu1 %vm466_vm1, %v414_v53  ;;  %v389_v63 = vmax.f32 %v293_v56, 0.0 }
  0xf1   :  { %v288_v62 = vadd.f32 %v1829_v26, %v287_v61  ;;  %v387_v1 = vmax.f32 %v285_v58, 0.0 }
  0xf2   :  { %v390_v0 = vmax.f32 %v296_v60, 0.0 }
  0xf3   :  { %v388_v2 = vmax.f32 %v288_v62, 0.0 }
  0xf4   :  { %v416_v3 = vpack.c.bf16 %v390_v0, %v389_v63 }
  0xf5   :  { %v415_v4 = vpack.c.bf16 %v388_v2, %v387_v1  ;;  %v1490_v5 = vpop.f32.mrb[12].mxu0 }
  0xf6   :  { %v309_v6 = vadd.f32 %v1490_v5, %v1829_v26  ;;  %v300_v7 = vpop.f32.mrb[13].mxu0 }
  0xf7   :  { %v301_v8 = vadd.f32 %v1829_v26, %v300_v7  ;;  %v1491_v9 = vpop.f32.mrb[14].mxu0  ;;  %1524 = vmatprep.mubr.msk.bf16.mxu1 %vm466_vm1, %v415_v4 }
  0xf8   :  { %v312_v10 = vadd.f32 %v1491_v9, %v1829_v26  ;;  %v303_v11 = vpop.f32.mrb[15].mxu0  ;;  %1525 = vmatmul.mubr.msk.bf16.gmra.mrb[8].mxu1 %vm466_vm1, %v416_v3  ;;  %v393_v13 = vmax.f32 %v309_v6, 0.0 }
  0xf9   :  { %v304_v12 = vadd.f32 %v1829_v26, %v303_v11  ;;  %v391_v15 = vmax.f32 %v301_v8, 0.0 }
  0xfa   :  { %v394_v14 = vmax.f32 %v312_v10, 0.0 }
  0xfb   :  { %v392_v16 = vmax.f32 %v304_v12, 0.0  ;;  %v1653_v12 = vld [vmem:[%s2047_s7] sm:$0xff]  }
  0xfc   :  { %v418_v17 = vpack.c.bf16 %v394_v14, %v393_v13  ;;  %v1654_v13 = vld [vmem:[%s2047_s7 + $0x8] sm:$0xff]   ;;  %1588 = vmatprep.subr.bf16.mxu1 %v1653_v12 }
  0xfd   :  { %v417_v18 = vpack.c.bf16 %v392_v16, %v391_v15  ;;  %v1494_v19 = vpop.f32.mrb[16].mxu0  ;;  %1589 = vmatpush3.bf16.msra.mxu1 %v1653_v12 }
  0xfe   :  { %v325_v20 = vadd.f32 %v1494_v19, %v1829_v26  ;;  %v316_v21 = vpop.f32.mrb[17].mxu0  ;;  %1590 = vmatprep.subr.bf16.mxu1 %v1654_v13 }
  0xff   :  { %v317_v22 = vadd.f32 %v1829_v26, %v316_v21  ;;  %v1495_v23 = vpop.f32.mrb[18].mxu0  ;;  %1528 = vmatprep.mubr.msk.bf16.mxu1 %vm466_vm1, %v417_v18 }
 0x100   :  { %v328_v24 = vadd.f32 %v1495_v23, %v1829_v26  ;;  %v319_v25 = vpop.f32.mrb[19].mxu0  ;;  %1529 = vmatmul.mubr.msk.bf16.gmra.mrb[12].mxu1 %vm466_vm1, %v418_v17  ;;  %v397_v28 = vmax.f32 %v325_v20, 0.0 }
 0x101   :  { %v320_v27 = vadd.f32 %v1829_v26, %v319_v25  ;;  %v395_v30 = vmax.f32 %v317_v22, 0.0  ;;  %1591 = vmatpush3.bf16.msra.mxu1 %v1654_v13 }
 0x102   :  { %v398_v29 = vmax.f32 %v328_v24, 0.0 }
 0x103   :  { %v396_v31 = vmax.f32 %v320_v27, 0.0 }
 0x104   :  { %v420_v32 = vpack.c.bf16 %v398_v29, %v397_v28 }
 0x105   :  { %v419_v33 = vpack.c.bf16 %v396_v31, %v395_v30  ;;  %v1498_v34 = vpop.f32.mrb[20].mxu0 }
 0x106   :  { %v341_v35 = vadd.f32 %v1498_v34, %v1829_v26  ;;  %v332_v36 = vpop.f32.mrb[21].mxu0 }
 0x107   :  { %v333_v37 = vadd.f32 %v1829_v26, %v332_v36  ;;  %v1499_v38 = vpop.f32.mrb[22].mxu0  ;;  %1532 = vmatprep.mubr.msk.bf16.mxu1 %vm466_vm1, %v419_v33 }
 0x108   :  { %v344_v39 = vadd.f32 %v1499_v38, %v1829_v26  ;;  %v335_v40 = vpop.f32.mrb[23].mxu0  ;;  %1533 = vmatmul.mubr.msk.bf16.gmra.mrb[16].mxu1 %vm466_vm1, %v420_v32  ;;  %v401_v42 = vmax.f32 %v341_v35, 0.0 }
 0x109   :  { %v336_v41 = vadd.f32 %v1829_v26, %v335_v40  ;;  %v399_v44 = vmax.f32 %v333_v37, 0.0 }
 0x10a   :  { %v402_v43 = vmax.f32 %v344_v39, 0.0 }
 0x10b   :  { %v400_v45 = vmax.f32 %v336_v41, 0.0 }
 0x10c   :  { %v422_v46 = vpack.c.bf16 %v402_v43, %v401_v42 }
 0x10d   :  { %v421_v47 = vpack.c.bf16 %v400_v45, %v399_v44  ;;  %v1502_v48 = vpop.f32.mrb[24].mxu0 }
 0x10e   :  { %v357_v49 = vadd.f32 %v1502_v48, %v1829_v26  ;;  %v348_v50 = vpop.f32.mrb[25].mxu0 }
 0x10f   :  { %v349_v51 = vadd.f32 %v1829_v26, %v348_v50  ;;  %v1503_v52 = vpop.f32.mrb[26].mxu0  ;;  %1536 = vmatprep.mubr.msk.bf16.mxu1 %vm466_vm1, %v421_v47 }
 0x110   :  { %v360_v53 = vadd.f32 %v1503_v52, %v1829_v26  ;;  %v351_v54 = vpop.f32.mrb[27].mxu0  ;;  %1537 = vmatmul.mubr.msk.bf16.gmra.mrb[20].mxu1 %vm466_vm1, %v422_v46  ;;  %v405_v56 = vmax.f32 %v357_v49, 0.0 }
 0x111   :  { %v352_v55 = vadd.f32 %v1829_v26, %v351_v54  ;;  %v403_v58 = vmax.f32 %v349_v51, 0.0 }
 0x112   :  { %v406_v57 = vmax.f32 %v360_v53, 0.0 }
 0x113   :  { %v404_v59 = vmax.f32 %v352_v55, 0.0 }
 0x114   :  { %v424_v60 = vpack.c.bf16 %v406_v57, %v405_v56 }
 0x115   :  { %v423_v61 = vpack.c.bf16 %v404_v59, %v403_v58  ;;  %v1506_v62 = vpop.f32.mrb[28].mxu0 }
 0x116   :  { %v373_v63 = vadd.f32 %v1506_v62, %v1829_v26  ;;  %v364_v0 = vpop.f32.mrb[29].mxu0 }
 0x117   :  { %v365_v1 = vadd.f32 %v1829_v26, %v364_v0  ;;  %v1507_v2 = vpop.f32.mrb[30].mxu0  ;;  %1540 = vmatprep.mubr.msk.bf16.mxu1 %vm466_vm1, %v423_v61 }
 0x118   :  { %v376_v3 = vadd.f32 %v1507_v2, %v1829_v26  ;;  %v367_v4 = vpop.f32.mrb[31].mxu0  ;;  %1541 = vmatmul.mubr.msk.bf16.gmra.mrb[24].mxu1 %vm466_vm1, %v424_v60  ;;  %v409_v6 = vmax.f32 %v373_v63, 0.0 }
 0x119   :  { %v368_v5 = vadd.f32 %v1829_v26, %v367_v4  ;;  %v407_v8 = vmax.f32 %v365_v1, 0.0  ;;  %v1888_v26 = vld [vmem:[%s2044_s4] ss:$0 sm:$0xff] }
 0x11a   :  { %v410_v7 = vmax.f32 %v376_v3, 0.0 }
 0x11b   :  { %v408_v9 = vmax.f32 %v368_v5, 0.0 }
 0x11c   :  { %v426_v10 = vpack.c.bf16 %v410_v7, %v409_v6 }
 0x11d   :  { %v425_v11 = vpack.c.bf16 %v408_v9, %v407_v8 }
 0x11f   :  { %1544 = vmatprep.mubr.msk.bf16.mxu1 %vm466_vm1, %v425_v11 }
 0x120   :  { %1545 = vmatmul.mubr.msk.bf16.gmra.mrb[28].mxu1 %vm466_vm1, %v426_v10 }
 0x1bb   :  { %v1518_v14 = vpop.f32.mrb[0].mxu1 }
 0x1bc   :  { %v558_v15 = vadd.f32 %v1518_v14, %v1888_v26  ;;  %v549_v16 = vpop.f32.mrb[1].mxu1 }
 0x1bd   :  { %v550_v17 = vadd.f32 %v1888_v26, %v549_v16  ;;  %v1519_v18 = vpop.f32.mrb[2].mxu1 }
 0x1be   :  { %v561_v19 = vadd.f32 %v1519_v18, %v1888_v26  ;;  %v552_v20 = vpop.f32.mrb[3].mxu1  ;;  %v678_v22 = vmax.f32 %v558_v15, 0.0 }
 0x1bf   :  { %v553_v21 = vadd.f32 %v1888_v26, %v552_v20  ;;  %v676_v24 = vmax.f32 %v550_v17, 0.0 }
 0x1c0   :  { %v679_v23 = vmax.f32 %v561_v19, 0.0 }
 0x1c1   :  { %v677_v25 = vmax.f32 %v553_v21, 0.0 }
 0x1c2   :  { %v709_v27 = vpack.c.bf16 %v679_v23, %v678_v22 }
 0x1c3   :  { %v708_v28 = vpack.c.bf16 %v677_v25, %v676_v24  ;;  %v1522_v29 = vpop.f32.mrb[4].mxu1 }
 0x1c4   :  { %v574_v30 = vadd.f32 %v1522_v29, %v1888_v26  ;;  %v565_v31 = vpop.f32.mrb[5].mxu1 }
 0x1c5   :  { %v566_v32 = vadd.f32 %v1888_v26, %v565_v31  ;;  %v1523_v33 = vpop.f32.mrb[6].mxu1  ;;  %1556 = vmatprep.mubr.msk.bf16.mxu0 %vm466_vm1, %v708_v28 }
 0x1c6   :  { %v577_v34 = vadd.f32 %v1523_v33, %v1888_v26  ;;  %v568_v35 = vpop.f32.mrb[7].mxu1  ;;  %1557 = vmatmul.mubr.msk.bf16.vlgmr.msra.gmra.mrb[32].mxu0 %vm466_vm1, %v709_v27  ;;  %v682_v37 = vmax.f32 %v574_v30, 0.0 }
 0x1c7   :  { %v569_v36 = vadd.f32 %v1888_v26, %v568_v35  ;;  %v680_v39 = vmax.f32 %v566_v32, 0.0 }
 0x1c8   :  { %v683_v38 = vmax.f32 %v577_v34, 0.0 }
 0x1c9   :  { %v681_v40 = vmax.f32 %v569_v36, 0.0 }
 0x1ca   :  { %v711_v41 = vpack.c.bf16 %v683_v38, %v682_v37 }
 0x1cb   :  { %v710_v42 = vpack.c.bf16 %v681_v40, %v680_v39  ;;  %v1526_v43 = vpop.f32.mrb[8].mxu1 }
 0x1cc   :  { %v590_v44 = vadd.f32 %v1526_v43, %v1888_v26  ;;  %v581_v45 = vpop.f32.mrb[9].mxu1 }
 0x1cd   :  { %v582_v46 = vadd.f32 %v1888_v26, %v581_v45  ;;  %v1527_v47 = vpop.f32.mrb[10].mxu1  ;;  %1560 = vmatprep.mubr.msk.bf16.mxu0 %vm466_vm1, %v710_v42 }
 0x1ce   :  { %v593_v48 = vadd.f32 %v1527_v47, %v1888_v26  ;;  %v584_v49 = vpop.f32.mrb[11].mxu1  ;;  %1561 = vmatmul.mubr.msk.bf16.gmra.mrb[36].mxu0 %vm466_vm1, %v711_v41  ;;  %v686_v51 = vmax.f32 %v590_v44, 0.0 }
 0x1cf   :  { %v585_v50 = vadd.f32 %v1888_v26, %v584_v49  ;;  %v684_v53 = vmax.f32 %v582_v46, 0.0 }
 0x1d0   :  { %v687_v52 = vmax.f32 %v593_v48, 0.0 }
 0x1d1   :  { %v685_v54 = vmax.f32 %v585_v50, 0.0 }
 0x1d2   :  { %v713_v55 = vpack.c.bf16 %v687_v52, %v686_v51 }
 0x1d3   :  { %v712_v56 = vpack.c.bf16 %v685_v54, %v684_v53  ;;  %v1530_v57 = vpop.f32.mrb[12].mxu1 }
 0x1d4   :  { %v606_v58 = vadd.f32 %v1530_v57, %v1888_v26  ;;  %v597_v59 = vpop.f32.mrb[13].mxu1 }
 0x1d5   :  { %v598_v60 = vadd.f32 %v1888_v26, %v597_v59  ;;  %v1531_v61 = vpop.f32.mrb[14].mxu1  ;;  %1564 = vmatprep.mubr.msk.bf16.mxu0 %vm466_vm1, %v712_v56 }
 0x1d6   :  { %v609_v62 = vadd.f32 %v1531_v61, %v1888_v26  ;;  %v600_v63 = vpop.f32.mrb[15].mxu1  ;;  %1565 = vmatmul.mubr.msk.bf16.gmra.mrb[40].mxu0 %vm466_vm1, %v713_v55  ;;  %v690_v1 = vmax.f32 %v606_v58, 0.0 }
 0x1d7   :  { %v601_v0 = vadd.f32 %v1888_v26, %v600_v63  ;;  %v688_v3 = vmax.f32 %v598_v60, 0.0 }
 0x1d8   :  { %v691_v2 = vmax.f32 %v609_v62, 0.0 }
 0x1d9   :  { %v689_v4 = vmax.f32 %v601_v0, 0.0  ;;  %v1941_v0 = vld [vmem:[%s2046_s6] ss:$0 sm:$0xff] }
 0x1da   :  { %v715_v5 = vpack.c.bf16 %v691_v2, %v690_v1 }
 0x1db   :  { %v714_v6 = vpack.c.bf16 %v689_v4, %v688_v3  ;;  %v1534_v7 = vpop.f32.mrb[16].mxu1 }
 0x1dc   :  { %v622_v8 = vadd.f32 %v1534_v7, %v1888_v26  ;;  %v613_v9 = vpop.f32.mrb[17].mxu1 }
 0x1dd   :  { %v614_v10 = vadd.f32 %v1888_v26, %v613_v9  ;;  %v1535_v11 = vpop.f32.mrb[18].mxu1  ;;  %1568 = vmatprep.mubr.msk.bf16.mxu0 %vm466_vm1, %v714_v6 }
 0x1de   :  { %v625_v12 = vadd.f32 %v1535_v11, %v1888_v26  ;;  %v616_v13 = vpop.f32.mrb[19].mxu1  ;;  %1569 = vmatmul.mubr.msk.bf16.gmra.mrb[44].mxu0 %vm466_vm1, %v715_v5  ;;  %v694_v15 = vmax.f32 %v622_v8, 0.0 }
 0x1df   :  { %v617_v14 = vadd.f32 %v1888_v26, %v616_v13  ;;  %v692_v17 = vmax.f32 %v614_v10, 0.0 }
 0x1e0   :  { %v695_v16 = vmax.f32 %v625_v12, 0.0 }
 0x1e1   :  { %v693_v18 = vmax.f32 %v617_v14, 0.0 }
 0x1e2   :  { %v717_v19 = vpack.c.bf16 %v695_v16, %v694_v15 }
 0x1e3   :  { %v716_v20 = vpack.c.bf16 %v693_v18, %v692_v17  ;;  %v1538_v21 = vpop.f32.mrb[20].mxu1 }
 0x1e4   :  { %v638_v22 = vadd.f32 %v1538_v21, %v1888_v26  ;;  %v629_v23 = vpop.f32.mrb[21].mxu1 }
 0x1e5   :  { %v630_v24 = vadd.f32 %v1888_v26, %v629_v23  ;;  %v1539_v25 = vpop.f32.mrb[22].mxu1  ;;  %1572 = vmatprep.mubr.msk.bf16.mxu0 %vm466_vm1, %v716_v20 }
 0x1e6   :  { %v641_v27 = vadd.f32 %v1539_v25, %v1888_v26  ;;  %v632_v28 = vpop.f32.mrb[23].mxu1  ;;  %1573 = vmatmul.mubr.msk.bf16.gmra.mrb[48].mxu0 %vm466_vm1, %v717_v19  ;;  %v698_v30 = vmax.f32 %v638_v22, 0.0 }
 0x1e7   :  { %v633_v29 = vadd.f32 %v1888_v26, %v632_v28  ;;  %v696_v32 = vmax.f32 %v630_v24, 0.0 }
 0x1e8   :  { %v699_v31 = vmax.f32 %v641_v27, 0.0 }
 0x1e9   :  { %v697_v33 = vmax.f32 %v633_v29, 0.0 }
 0x1ea   :  { %v719_v34 = vpack.c.bf16 %v699_v31, %v698_v30 }
 0x1eb   :  { %v718_v35 = vpack.c.bf16 %v697_v33, %v696_v32  ;;  %v1542_v36 = vpop.f32.mrb[24].mxu1 }
 0x1ec   :  { %v654_v37 = vadd.f32 %v1542_v36, %v1888_v26  ;;  %v645_v38 = vpop.f32.mrb[25].mxu1 }
 0x1ed   :  { %v646_v39 = vadd.f32 %v1888_v26, %v645_v38  ;;  %v1543_v40 = vpop.f32.mrb[26].mxu1  ;;  %1576 = vmatprep.mubr.msk.bf16.mxu0 %vm466_vm1, %v718_v35 }
 0x1ee   :  { %v657_v41 = vadd.f32 %v1543_v40, %v1888_v26  ;;  %v648_v42 = vpop.f32.mrb[27].mxu1  ;;  %1577 = vmatmul.mubr.msk.bf16.gmra.mrb[52].mxu0 %vm466_vm1, %v719_v34  ;;  %v702_v44 = vmax.f32 %v654_v37, 0.0 }
 0x1ef   :  { %v649_v43 = vadd.f32 %v1888_v26, %v648_v42  ;;  %v700_v46 = vmax.f32 %v646_v39, 0.0 }
 0x1f0   :  { %v703_v45 = vmax.f32 %v657_v41, 0.0 }
 0x1f1   :  { %v701_v47 = vmax.f32 %v649_v43, 0.0 }
 0x1f2   :  { %v721_v48 = vpack.c.bf16 %v703_v45, %v702_v44 }
 0x1f3   :  { %v720_v49 = vpack.c.bf16 %v701_v47, %v700_v46  ;;  %v1546_v50 = vpop.f32.mrb[28].mxu1 }
 0x1f4   :  { %v670_v51 = vadd.f32 %v1546_v50, %v1888_v26  ;;  %v661_v52 = vpop.f32.mrb[29].mxu1 }
 0x1f5   :  { %v662_v53 = vadd.f32 %v1888_v26, %v661_v52  ;;  %v1547_v54 = vpop.f32.mrb[30].mxu1  ;;  %1580 = vmatprep.mubr.msk.bf16.mxu0 %vm466_vm1, %v720_v49 }
 0x1f6   :  { %v673_v55 = vadd.f32 %v1547_v54, %v1888_v26  ;;  %v664_v56 = vpop.f32.mrb[31].mxu1  ;;  %1581 = vmatmul.mubr.msk.bf16.gmra.mrb[56].mxu0 %vm466_vm1, %v721_v48  ;;  %v706_v58 = vmax.f32 %v670_v51, 0.0 }
 0x1f7   :  { %v665_v57 = vadd.f32 %v1888_v26, %v664_v56  ;;  %v704_v60 = vmax.f32 %v662_v53, 0.0 }
 0x1f8   :  { %v707_v59 = vmax.f32 %v673_v55, 0.0 }
 0x1f9   :  { %v705_v61 = vmax.f32 %v665_v57, 0.0 }
 0x1fa   :  { %v723_v62 = vpack.c.bf16 %v707_v59, %v706_v58 }
 0x1fb   :  { %v722_v63 = vpack.c.bf16 %v705_v61, %v704_v60 }
 0x1fd   :  { %1584 = vmatprep.mubr.msk.bf16.mxu0 %vm466_vm1, %v722_v63 }
 0x1fe   :  { %1585 = vmatmul.mubr.msk.bf16.gmra.mrb[60].mxu0 %vm466_vm1, %v723_v62 }
 0x299   :  { %v1558_v1 = vpop.f32.mrb[32].mxu0 }
 0x29a   :  { %v854_v2 = vadd.f32 %v1558_v1, %v1941_v0  ;;  %v845_v3 = vpop.f32.mrb[33].mxu0 }
 0x29b   :  { %v846_v26 = vadd.f32 %v1941_v0, %v845_v3  ;;  %v1559_v4 = vpop.f32.mrb[34].mxu0 }
 0x29c   :  { %v857_v5 = vadd.f32 %v1559_v4, %v1941_v0  ;;  %v848_v6 = vpop.f32.mrb[35].mxu0  ;;  %v974_v8 = vmax.f32 %v854_v2, 0.0 }
 0x29d   :  { %v849_v7 = vadd.f32 %v1941_v0, %v848_v6  ;;  %v972_v10 = vmax.f32 %v846_v26, 0.0 }
 0x29e   :  { %v975_v9 = vmax.f32 %v857_v5, 0.0 }
 0x29f   :  { %v973_v11 = vmax.f32 %v849_v7, 0.0 }
 0x2a0   :  { %v1005_v12 = vpack.c.bf16 %v975_v9, %v974_v8 }
 0x2a1   :  { %v1004_v13 = vpack.c.bf16 %v973_v11, %v972_v10  ;;  %v1562_v14 = vpop.f32.mrb[36].mxu0 }
 0x2a2   :  { %v870_v15 = vadd.f32 %v1562_v14, %v1941_v0  ;;  %v861_v16 = vpop.f32.mrb[37].mxu0 }
 0x2a3   :  { %v862_v17 = vadd.f32 %v1941_v0, %v861_v16  ;;  %v1563_v18 = vpop.f32.mrb[38].mxu0  ;;  %1592 = vmatprep.mubr.msk.bf16.mxu1 %vm169_vm0, %v1004_v13 }
 0x2a4   :  { %v873_v19 = vadd.f32 %v1563_v18, %v1941_v0  ;;  %v864_v20 = vpop.f32.mrb[39].mxu0  ;;  %1593 = vmatmul.mubr.msk.bf16.vlgmr.msra.gmra.mrb[32].mxu1 %vm169_vm0, %v1005_v12  ;;  %v978_v22 = vmax.f32 %v870_v15, 0.0 }
 0x2a5   :  { %v865_v21 = vadd.f32 %v1941_v0, %v864_v20  ;;  %v976_v24 = vmax.f32 %v862_v17, 0.0 }
 0x2a6   :  { %v979_v23 = vmax.f32 %v873_v19, 0.0 }
 0x2a7   :  { %v977_v25 = vmax.f32 %v865_v21, 0.0 }
 0x2a8   :  { %v1007_v27 = vpack.c.bf16 %v979_v23, %v978_v22 }
 0x2a9   :  { %v1006_v28 = vpack.c.bf16 %v977_v25, %v976_v24  ;;  %v1566_v29 = vpop.f32.mrb[40].mxu0 }
 0x2aa   :  { %v886_v30 = vadd.f32 %v1566_v29, %v1941_v0  ;;  %v877_v31 = vpop.f32.mrb[41].mxu0 }
 0x2ab   :  { %v878_v32 = vadd.f32 %v1941_v0, %v877_v31  ;;  %v1567_v33 = vpop.f32.mrb[42].mxu0  ;;  %1596 = vmatprep.mubr.msk.bf16.mxu1 %vm169_vm0, %v1006_v28 }
 0x2ac   :  { %v889_v34 = vadd.f32 %v1567_v33, %v1941_v0  ;;  %v880_v35 = vpop.f32.mrb[43].mxu0  ;;  %1597 = vmatmul.mubr.msk.bf16.gmra.mrb[36].mxu1 %vm169_vm0, %v1007_v27  ;;  %v982_v37 = vmax.f32 %v886_v30, 0.0 }
 0x2ad   :  { %v881_v36 = vadd.f32 %v1941_v0, %v880_v35  ;;  %v980_v39 = vmax.f32 %v878_v32, 0.0 }
 0x2ae   :  { %v983_v38 = vmax.f32 %v889_v34, 0.0 }
 0x2af   :  { %v981_v40 = vmax.f32 %v881_v36, 0.0 }
 0x2b0   :  { %v1009_v41 = vpack.c.bf16 %v983_v38, %v982_v37 }
 0x2b1   :  { %v1008_v42 = vpack.c.bf16 %v981_v40, %v980_v39  ;;  %v1570_v43 = vpop.f32.mrb[44].mxu0 }
 0x2b2   :  { %v902_v44 = vadd.f32 %v1570_v43, %v1941_v0  ;;  %v893_v45 = vpop.f32.mrb[45].mxu0 }
 0x2b3   :  { %v894_v46 = vadd.f32 %v1941_v0, %v893_v45  ;;  %v1571_v47 = vpop.f32.mrb[46].mxu0  ;;  %1600 = vmatprep.mubr.msk.bf16.mxu1 %vm169_vm0, %v1008_v42 }
 0x2b4   :  { %v905_v48 = vadd.f32 %v1571_v47, %v1941_v0  ;;  %v896_v49 = vpop.f32.mrb[47].mxu0  ;;  %1601 = vmatmul.mubr.msk.bf16.gmra.mrb[40].mxu1 %vm169_vm0, %v1009_v41  ;;  %v986_v51 = vmax.f32 %v902_v44, 0.0 }
 0x2b5   :  { %v897_v50 = vadd.f32 %v1941_v0, %v896_v49  ;;  %v984_v53 = vmax.f32 %v894_v46, 0.0 }
 0x2b6   :  { %v987_v52 = vmax.f32 %v905_v48, 0.0 }
 0x2b7   :  { %v985_v54 = vmax.f32 %v897_v50, 0.0  ;;  %v1994_v50 = vld [vmem:[%s2048_s8] ss:$0 sm:$0xff]  ;;  %s1679_s8 = smov [#allocation2]  }
 0x2b8   :  { %v1011_v55 = vpack.c.bf16 %v987_v52, %v986_v51  ;;  %s1289_s21 = sshll.u32 %s1679_s8, 4  ;;  %s1290_s21 = int_to_ptr.vmem [resolvable:$true] %s1289_s21 }
 0x2b9   :  { %v1010_v56 = vpack.c.bf16 %v985_v54, %v984_v53  ;;  %v1574_v57 = vpop.f32.mrb[48].mxu0  ;;  %s1655_s22 = scalar_lea.vmem %s1290_s21, 4096  ;;  %p1660_p1 = scmp.lt.s32.totalorder %s1290_s21, %s1290_s21 }
 0x2ba   :  { %v918_v58 = vadd.f32 %v1574_v57, %v1941_v0  ;;  %v909_v59 = vpop.f32.mrb[49].mxu0  ;;  %p1656_p0 = scmp.ne.s32.totalorder %s1290_s21, %s1655_s22  ;;  %p1661_p2 = scmp.lt.s32.totalorder %s1655_s22, %s1655_s22 }
 0x2bb   :  { %v910_v60 = vadd.f32 %v1941_v0, %v909_v59  ;;  %v1575_v61 = vpop.f32.mrb[50].mxu0  ;;  %1604 = vmatprep.mubr.msk.bf16.mxu1 %vm169_vm0, %v1010_v56 }
 0x2bc   :  { %v921_v62 = vadd.f32 %v1575_v61, %v1941_v0  ;;  %v912_v63 = vpop.f32.mrb[51].mxu0  ;;  %1605 = vmatmul.mubr.msk.bf16.gmra.mrb[44].mxu1 %vm169_vm0, %v1011_v55  ;;  %v990_v2 = vmax.f32 %v918_v58, 0.0  ;;  %p1662_p3 = por %p1661_p2, %p1660_p1 }
 0x2bd   :  { %v913_v1 = vadd.f32 %v1941_v0, %v912_v63  ;;  %v988_v26 = vmax.f32 %v910_v60, 0.0 }
 0x2be   :  { %v991_v3 = vmax.f32 %v921_v62, 0.0  ;;  %p1663_p4 = pnand %p1662_p3, %p1656_p0 }
 0x2bf   :  { %v989_v4 = vmax.f32 %v913_v1, 0.0 }
 0x2c0   :  { %v1013_v5 = vpack.c.bf16 %v991_v3, %v990_v2 }
 0x2c1   :  { %v1012_v6 = vpack.c.bf16 %v989_v4, %v988_v26  ;;  %v1578_v7 = vpop.f32.mrb[52].mxu0 }
 0x2c2   :  { %v934_v8 = vadd.f32 %v1578_v7, %v1941_v0  ;;  %v925_v9 = vpop.f32.mrb[53].mxu0 }
 0x2c3   :  { %v926_v10 = vadd.f32 %v1941_v0, %v925_v9  ;;  %v1579_v11 = vpop.f32.mrb[54].mxu0  ;;  %1608 = vmatprep.mubr.msk.bf16.mxu1 %vm169_vm0, %v1012_v6 }
 0x2c4   :  { %v937_v12 = vadd.f32 %v1579_v11, %v1941_v0  ;;  %v928_v13 = vpop.f32.mrb[55].mxu0  ;;  %1609 = vmatmul.mubr.msk.bf16.gmra.mrb[48].mxu1 %vm169_vm0, %v1013_v5  ;;  %v994_v15 = vmax.f32 %v934_v8, 0.0 }
 0x2c5   :  { %v929_v14 = vadd.f32 %v1941_v0, %v928_v13  ;;  %v992_v17 = vmax.f32 %v926_v10, 0.0 }
 0x2c6   :  { %v995_v16 = vmax.f32 %v937_v12, 0.0 }
 0x2c7   :  { %v993_v18 = vmax.f32 %v929_v14, 0.0 }
 0x2c8   :  { %v1015_v19 = vpack.c.bf16 %v995_v16, %v994_v15 }
 0x2c9   :  { %v1014_v20 = vpack.c.bf16 %v993_v18, %v992_v17  ;;  %v1582_v21 = vpop.f32.mrb[56].mxu0 }
 0x2ca   :  { %v950_v22 = vadd.f32 %v1582_v21, %v1941_v0  ;;  %v941_v23 = vpop.f32.mrb[57].mxu0 }
 0x2cb   :  { %v942_v24 = vadd.f32 %v1941_v0, %v941_v23  ;;  %v1583_v25 = vpop.f32.mrb[58].mxu0  ;;  %1612 = vmatprep.mubr.msk.bf16.mxu1 %vm169_vm0, %v1014_v20 }
 0x2cc   :  { %v953_v27 = vadd.f32 %v1583_v25, %v1941_v0  ;;  %v944_v28 = vpop.f32.mrb[59].mxu0  ;;  %1613 = vmatmul.mubr.msk.bf16.gmra.mrb[52].mxu1 %vm169_vm0, %v1015_v19  ;;  %v998_v30 = vmax.f32 %v950_v22, 0.0 }
 0x2cd   :  { %v945_v29 = vadd.f32 %v1941_v0, %v944_v28  ;;  %v996_v32 = vmax.f32 %v942_v24, 0.0 }
 0x2ce   :  { %v999_v31 = vmax.f32 %v953_v27, 0.0 }
 0x2cf   :  { %v997_v33 = vmax.f32 %v945_v29, 0.0 }
 0x2d0   :  { %v1017_v34 = vpack.c.bf16 %v999_v31, %v998_v30 }
 0x2d1   :  { %v1016_v35 = vpack.c.bf16 %v997_v33, %v996_v32  ;;  %v1586_v36 = vpop.f32.mrb[60].mxu0 }
 0x2d2   :  { %v966_v37 = vadd.f32 %v1586_v36, %v1941_v0  ;;  %v957_v38 = vpop.f32.mrb[61].mxu0 }
 0x2d3   :  { %v958_v39 = vadd.f32 %v1941_v0, %v957_v38  ;;  %v1587_v40 = vpop.f32.mrb[62].mxu0  ;;  %1616 = vmatprep.mubr.msk.bf16.mxu1 %vm169_vm0, %v1016_v35 }
 0x2d4   :  { %v969_v41 = vadd.f32 %v1587_v40, %v1941_v0  ;;  %v960_v42 = vpop.f32.mrb[63].mxu0  ;;  %1617 = vmatmul.mubr.msk.bf16.gmra.mrb[56].mxu1 %vm169_vm0, %v1017_v34  ;;  %v1002_v44 = vmax.f32 %v966_v37, 0.0 }
 0x2d5   :  { %v961_v43 = vadd.f32 %v1941_v0, %v960_v42  ;;  %v1000_v46 = vmax.f32 %v958_v39, 0.0 }
 0x2d6   :  { %v1003_v45 = vmax.f32 %v969_v41, 0.0 }
 0x2d7   :  { %v1001_v47 = vmax.f32 %v961_v43, 0.0 }
 0x2d8   :  { %v1019_v48 = vpack.c.bf16 %v1003_v45, %v1002_v44 }
 0x2d9   :  { %v1018_v49 = vpack.c.bf16 %v1001_v47, %v1000_v46 }
 0x2db   :  { %1620 = vmatprep.mubr.msk.bf16.mxu1 %vm169_vm0, %v1018_v49 }
 0x2dc   :  { %1621 = vmatmul.mubr.msk.bf16.gmra.mrb[60].mxu1 %vm169_vm0, %v1019_v48 }
 0x377   :  { %v1594_v51 = vpop.f32.mrb[32].mxu1 }
 0x378   :  { %v1134_v52 = vadd.f32 %v1594_v51, %v1994_v50  ;;  %v1125_v53 = vpop.f32.mrb[33].mxu1 }
 0x379   :  { %v1126_v0 = vadd.f32 %v1994_v50, %v1125_v53  ;;  %v1595_v54 = vpop.f32.mrb[34].mxu1 }
 0x37a   :  { %1254 = vst [vmem:[#allocation2 + $0x10] sm:$0xff] %v1134_v52  ;;  %v1137_v55 = vadd.f32 %v1595_v54, %v1994_v50  ;;  %v1128_v56 = vpop.f32.mrb[35].mxu1 }
 0x37b   :  { %1252 = vst [vmem:[#allocation2] sm:$0xff] %v1126_v0  ;;  %v1129_v57 = vadd.f32 %v1994_v50, %v1128_v56 }
 0x37c   :  { %1255 = vst [vmem:[#allocation2 + $0x18] sm:$0xff] %v1137_v55 }
 0x37d   :  { %1253 = vst [vmem:[#allocation2 + $0x8] sm:$0xff] %v1129_v57 }
 0x37f   :  { %v1598_v58 = vpop.f32.mrb[36].mxu1 }
 0x380   :  { %v1150_v59 = vadd.f32 %v1598_v58, %v1994_v50  ;;  %v1141_v60 = vpop.f32.mrb[37].mxu1 }
 0x381   :  { %v1142_v61 = vadd.f32 %v1994_v50, %v1141_v60  ;;  %v1599_v62 = vpop.f32.mrb[38].mxu1 }
 0x382   :  { %1258 = vst [vmem:[#allocation2 + $0x30] sm:$0xff] %v1150_v59  ;;  %v1153_v63 = vadd.f32 %v1599_v62, %v1994_v50  ;;  %v1144_v1 = vpop.f32.mrb[39].mxu1 }
 0x383   :  { %1256 = vst [vmem:[#allocation2 + $0x20] sm:$0xff] %v1142_v61  ;;  %v1145_v2 = vadd.f32 %v1994_v50, %v1144_v1 }
 0x384   :  { %1259 = vst [vmem:[#allocation2 + $0x38] sm:$0xff] %v1153_v63 }
 0x385   :  { %1257 = vst [vmem:[#allocation2 + $0x28] sm:$0xff] %v1145_v2 }
 0x387   :  { %v1602_v3 = vpop.f32.mrb[40].mxu1 }
 0x388   :  { %v1166_v26 = vadd.f32 %v1602_v3, %v1994_v50  ;;  %v1157_v4 = vpop.f32.mrb[41].mxu1 }
 0x389   :  { %v1158_v5 = vadd.f32 %v1994_v50, %v1157_v4  ;;  %v1603_v6 = vpop.f32.mrb[42].mxu1 }
 0x38a   :  { %1262 = vst [vmem:[#allocation2 + $0x50] sm:$0xff] %v1166_v26  ;;  %v1169_v7 = vadd.f32 %v1603_v6, %v1994_v50  ;;  %v1160_v8 = vpop.f32.mrb[43].mxu1 }
 0x38b   :  { %1260 = vst [vmem:[#allocation2 + $0x40] sm:$0xff] %v1158_v5  ;;  %v1161_v9 = vadd.f32 %v1994_v50, %v1160_v8 }
 0x38c   :  { %1263 = vst [vmem:[#allocation2 + $0x58] sm:$0xff] %v1169_v7 }
 0x38d   :  { %1261 = vst [vmem:[#allocation2 + $0x48] sm:$0xff] %v1161_v9 }
 0x38f   :  { %v1606_v10 = vpop.f32.mrb[44].mxu1 }
 0x390   :  { %v1182_v11 = vadd.f32 %v1606_v10, %v1994_v50  ;;  %v1173_v12 = vpop.f32.mrb[45].mxu1 }
 0x391   :  { %v1174_v13 = vadd.f32 %v1994_v50, %v1173_v12  ;;  %v1607_v14 = vpop.f32.mrb[46].mxu1 }
 0x392   :  { %1266 = vst [vmem:[#allocation2 + $0x70] sm:$0xff] %v1182_v11  ;;  %v1185_v15 = vadd.f32 %v1607_v14, %v1994_v50  ;;  %v1176_v16 = vpop.f32.mrb[47].mxu1 }
 0x393   :  { %1264 = vst [vmem:[#allocation2 + $0x60] sm:$0xff] %v1174_v13  ;;  %v1177_v17 = vadd.f32 %v1994_v50, %v1176_v16 }
 0x394   :  { %1267 = vst [vmem:[#allocation2 + $0x78] sm:$0xff] %v1185_v15 }
 0x395   :  { %1265 = vst [vmem:[#allocation2 + $0x68] sm:$0xff] %v1177_v17 }
 0x397   :  { %v1610_v18 = vpop.f32.mrb[48].mxu1 }
 0x398   :  { %v1198_v19 = vadd.f32 %v1610_v18, %v1994_v50  ;;  %v1189_v20 = vpop.f32.mrb[49].mxu1 }
 0x399   :  { %v1190_v21 = vadd.f32 %v1994_v50, %v1189_v20  ;;  %v1611_v22 = vpop.f32.mrb[50].mxu1 }
 0x39a   :  { %1270 = vst [vmem:[#allocation2 + $0x90] sm:$0xff] %v1198_v19  ;;  %v1201_v23 = vadd.f32 %v1611_v22, %v1994_v50  ;;  %v1192_v24 = vpop.f32.mrb[51].mxu1 }
 0x39b   :  { %1268 = vst [vmem:[#allocation2 + $0x80] sm:$0xff] %v1190_v21  ;;  %v1193_v25 = vadd.f32 %v1994_v50, %v1192_v24 }
 0x39c   :  { %1271 = vst [vmem:[#allocation2 + $0x98] sm:$0xff] %v1201_v23 }
 0x39d   :  { %1269 = vst [vmem:[#allocation2 + $0x88] sm:$0xff] %v1193_v25 }
 0x39f   :  { %v1614_v27 = vpop.f32.mrb[52].mxu1 }
 0x3a0   :  { %v1214_v28 = vadd.f32 %v1614_v27, %v1994_v50  ;;  %v1205_v29 = vpop.f32.mrb[53].mxu1 }
 0x3a1   :  { %v1206_v30 = vadd.f32 %v1994_v50, %v1205_v29  ;;  %v1615_v31 = vpop.f32.mrb[54].mxu1 }
 0x3a2   :  { %1274 = vst [vmem:[#allocation2 + $0xb0] sm:$0xff] %v1214_v28  ;;  %v1217_v32 = vadd.f32 %v1615_v31, %v1994_v50  ;;  %v1208_v33 = vpop.f32.mrb[55].mxu1 }
 0x3a3   :  { %1272 = vst [vmem:[#allocation2 + $0xa0] sm:$0xff] %v1206_v30  ;;  %v1209_v34 = vadd.f32 %v1994_v50, %v1208_v33 }
 0x3a4   :  { %1275 = vst [vmem:[#allocation2 + $0xb8] sm:$0xff] %v1217_v32 }
 0x3a5   :  { %1273 = vst [vmem:[#allocation2 + $0xa8] sm:$0xff] %v1209_v34 }
 0x3a7   :  { %v1618_v35 = vpop.f32.mrb[56].mxu1 }
 0x3a8   :  { %v1230_v36 = vadd.f32 %v1618_v35, %v1994_v50  ;;  %v1221_v37 = vpop.f32.mrb[57].mxu1 }
 0x3a9   :  { %v1222_v38 = vadd.f32 %v1994_v50, %v1221_v37  ;;  %v1619_v39 = vpop.f32.mrb[58].mxu1 }
 0x3aa   :  { %1278 = vst [vmem:[#allocation2 + $0xd0] sm:$0xff] %v1230_v36  ;;  %v1233_v40 = vadd.f32 %v1619_v39, %v1994_v50  ;;  %v1224_v41 = vpop.f32.mrb[59].mxu1 }
 0x3ab   :  { %1276 = vst [vmem:[#allocation2 + $0xc0] sm:$0xff] %v1222_v38  ;;  %v1225_v42 = vadd.f32 %v1994_v50, %v1224_v41 }
 0x3ac   :  { %1279 = vst [vmem:[#allocation2 + $0xd8] sm:$0xff] %v1233_v40 }
 0x3ad   :  { %1277 = vst [vmem:[#allocation2 + $0xc8] sm:$0xff] %v1225_v42 }
 0x3af   :  { %v1622_v43 = vpop.f32.mrb[60].mxu1 }
 0x3b0   :  { %v1246_v44 = vadd.f32 %v1622_v43, %v1994_v50  ;;  %v1237_v45 = vpop.f32.mrb[61].mxu1 }
 0x3b1   :  { %v1238_v46 = vadd.f32 %v1994_v50, %v1237_v45  ;;  %v1623_v47 = vpop.f32.mrb[62].mxu1 }
 0x3b2   :  { %1282 = vst [vmem:[#allocation2 + $0xf0] sm:$0xff] %v1246_v44  ;;  %v1249_v48 = vadd.f32 %v1623_v47, %v1994_v50  ;;  %v1240_v49 = vpop.f32.mrb[63].mxu1 }
 0x3b3   :  { %1280 = vst [vmem:[#allocation2 + $0xe0] sm:$0xff] %v1238_v46  ;;  %v1241_v51 = vadd.f32 %v1994_v50, %v1240_v49 }
 0x3b4   :  { %1283 = vst [vmem:[#allocation2 + $0xf8] sm:$0xff] %v1249_v48 }
 0x3b5   :  { %1281 = vst [vmem:[#allocation2 + $0xe8] sm:$0xff] %v1241_v51 }
 0x3b6   :  { %1666 = shalt.err (!%p1663_p4)
}
 0x3b7   :  { %s1667_s25 = scalar_lea.hbm %s2049_s9, 4096 }
 0x3b8   :  { %p1668_p5 = scmp.ne.s32.totalorder %s2049_s9, %s1667_s25  ;;  %p1671_p6 = scmp.lt.u32.totalorder %s1667_s25, %s2049_s9 }
 0x3ba   :  { %p1673_p7 = pnand %p1671_p6, %p1668_p5 }
 0x3bc   :  { %1676 = shalt.err (!%p1673_p7)
}
 0x3bd   :  { %s1680_s30 = smov 128   ;;  %s1681_s10 = smov 8  }
 0x3be   :  { %1295 = dma.vmem_to_hbm [thread:$0]  %s1290_s21, 4096, %s2049_s9, [#allocation3], %s1680_s30, %s1680_s30, %s1681_s10  }
 0x3bf   :  { %1677 = dma.done.wait [#allocation3], 4096  }
 0x3c0   :  { %1678 = vsyncadd [#allocation3], 4294963200 }
 0x3c1   :  { %1299 = vsyncpa [#allocation3], 1 }

</bundles_post_ra>
